<compile_context>
chip_gen: v7x
topology: tpu7x:2x2x1
jax: 0.10.0
libtpu: 0.0.40
codegen_flags: <defaults>
</compile_context>

<pallas_src>
import functools

import jax
import jax.numpy as jnp
from jax.experimental import pallas as pl
from jax.experimental.pallas import tpu as pltpu


def _irreverb_kernel(x_lo_ref, x_hi_ref, w_ref, dry_ref, o_ref,
                     acc_ref, win_ref, *, B, R, T, NQ):
    """Grid = (time super-block t [parallel], IR chunk group q [reduction])."""
    q = pl.program_id(1)

    @pl.when(q == 0)
    def _():
        acc_ref[...] = jnp.zeros_like(acc_ref)

    # Contiguous 2-super-block audio window: rows [0, 2R) of T samples each.
    win_ref[:, :R, :] = x_lo_ref[...]
    win_ref[:, R:, :] = x_hi_ref[...]

    # R dense (B*R, T) @ (T, T) bf16 MXU matmuls, accumulated in f32.
    wet = None
    for c_ in range(R):                         # static, unrolled
        a = win_ref[:, c_:c_ + R, :]            # (B, R, T) f32, static slice
        a2 = a.reshape(B * R, T).astype(jnp.bfloat16)
        w = w_ref[q * R + c_]                   # (T, T) bf16, VMEM-resident
        d = jnp.dot(a2, w, preferred_element_type=jnp.float32)
        wet = d if wet is None else wet + d
    acc_ref[...] += wet

    @pl.when(q == NQ - 1)
    def _():
        o_ref[...] = dry_ref[...] + acc_ref[...].reshape(B, R, T)


def ir_reverb_forward(audio, ir_param, *, tile=128, blocks_per_step=8):
    """out[b, n] = audio[b, n] + sum_k ir_full[k] * audio[b, n - k]  (causal),
    with ir_full = [0, ir_param]."""
    audio = audio.astype(jnp.float32)
    B, N = audio.shape
    T = tile                       # lane tile (multiple of 128)
    R = blocks_per_step            # time blocks fused per matmul (multiple of 8)
    assert T % 128 == 0 and R % 8 == 0

    ir_full = jnp.concatenate(
        [jnp.zeros((1,), jnp.float32), ir_param.astype(jnp.float32)])
    L = ir_full.shape[0]

    CT = pl.cdiv(L, T)             # T-sized chunks of the (reversed) IR
    NC = CT + 1                    # number of dense (T, T) Toeplitz tiles
    NQ = pl.cdiv(NC, R)            # chunk groups = reduction grid extent
    NB = pl.cdiv(N, R * T)         # output super-blocks = parallel grid extent
    S = R * T
    Nt = NB * S

    # Dense block-Toeplitz weight tiles: V[c][m, i] = h_rev_ext[c*T + m - i],
    # h_rev[j] = ir_full[L-1-j] (zero outside [0, L)).  Stored in bf16, padded
    # with zero tiles up to NQ*R so the in-kernel chunk loop is rectangular.
    h_ext = jnp.zeros(((CT + 2) * T,), jnp.float32).at[T:T + L].set(ir_full[::-1])
    c_idx = jnp.arange(NC)[:, None, None]
    m = jnp.arange(T)[None, :, None]
    i = jnp.arange(T)[None, None, :]
    V = h_ext[T + c_idx * T + m - i]                            # (NC, T, T) f32
    W = jnp.zeros((NQ * R, T, T), jnp.bfloat16).at[:NC].set(V.astype(jnp.bfloat16))

    # Padded + framed audio (B, NP, T): L-1 leading zeros (causal history) and
    # trailing zeros so every super-block index t+q+1 used by the kernel exists.
    NP = (NB + NQ) * R
    x_pad = jnp.zeros((B, NP * T), jnp.float32).at[:, L - 1:L - 1 + N].set(audio)
    x3 = x_pad.reshape(B, NP, T)

    # Dry path stays exact f32, framed to match the output layout.
    dry3 = jnp.zeros((B, Nt), jnp.float32).at[:, :N].set(audio).reshape(B, NB * R, T)

    kernel = functools.partial(_irreverb_kernel, B=B, R=R, T=T, NQ=NQ)
    out3 = pl.pallas_call(
        kernel,
        out_shape=jax.ShapeDtypeStruct((B, NB * R, T), jnp.float32),
        grid_spec=pltpu.PrefetchScalarGridSpec(
            num_scalar_prefetch=0,
            grid=(NB, NQ),
            in_specs=[
                # two consecutive R-block audio super-blocks (sliding window)
                pl.BlockSpec((B, R, T), lambda t, q: (0, t + q, 0)),
                pl.BlockSpec((B, R, T), lambda t, q: (0, t + q + 1, 0)),
                # full Toeplitz weight tensor, VMEM-resident (constant index)
                pl.BlockSpec((NQ * R, T, T), lambda t, q: (0, 0, 0)),
                # dry audio for the final add
                pl.BlockSpec((B, R, T), lambda t, q: (0, t, 0)),
            ],
            out_specs=pl.BlockSpec((B, R, T), lambda t, q: (0, t, 0)),
            scratch_shapes=[
                pltpu.VMEM((B * R, T), jnp.float32),      # f32 wet accumulator
                pltpu.VMEM((B, 2 * R, T), jnp.float32),   # contiguous audio window
            ],
        ),
        compiler_params=pltpu.CompilerParams(
            dimension_semantics=("parallel", "arbitrary"),
            vmem_limit_bytes=64 * 1024 * 1024,
        ),
    )(x3, x3, W, dry3)

    return out3.reshape(B, Nt)[:, :N]


if __name__ == "__main__":
    key = jax.random.PRNGKey(0)
    k_ir, k_audio = jax.random.split(key)

    # Small synthetic config (module default is sr=48000; shapes scaled down
    # but big enough to exercise multiple time super-blocks and chunk groups).
    sr = 1280
    ir_s = 1.0
    ir_length = int(ir_s * sr)                      # L = 1280  -> 10 IR chunks

    # Deterministic parameter init mirroring IRReverb.__init__:
    #   ir = (rand(L-1) - 0.5) * 0.1 * exp(-5 * linspace(0, 1, L-1))
    time = jnp.linspace(0.0, 1.0, ir_length - 1)
    ir_param = (jax.random.uniform(k_ir, (ir_length - 1,)) - 0.5) \
               * 0.1 * jnp.exp(-5.0 * time)

    batch, n_samples = 2, 4096
    audio = jax.random.uniform(k_audio, (batch, n_samples),
                               minval=-1.0, maxval=1.0)

    out = jax.block_until_ready(ir_reverb_forward(audio, ir_param))

    # Plain-JAX reference: audio + first-N samples of causal conv with [0, ir].
    ir_full = jnp.concatenate([jnp.zeros((1,)), ir_param])
    wet_ref = jax.vmap(
        lambda a: jnp.convolve(a, ir_full, precision="highest")[:n_samples])(audio)
    ref = audio + wet_ref

    assert out.shape == (batch, n_samples) and out.dtype == jnp.float32
    err = float(jnp.max(jnp.abs(out - ref)))
    # bf16 weights / bf16 MXU operands with f32 accumulation -> loosened tol.
    if not bool(jnp.allclose(out, ref, atol=3e-2, rtol=3e-2)):
        raise SystemExit("mismatch: max abs err = %g" % err)
    print("KERNEL_OK")
</pallas_src>

<mosaic_0001>
module attributes {stable_mosaic.version = 11 : i64} {
  func.func @_irreverb_kernel(%arg0: i32, %arg1: i32, %arg2: memref<2x8x128xf32, #tpu.memory_space<vmem>>, %arg3: memref<2x8x128xf32, #tpu.memory_space<vmem>>, %arg4: memref<16x128x128xbf16, #tpu.memory_space<vmem>>, %arg5: memref<2x8x128xf32, #tpu.memory_space<vmem>>, %arg6: memref<2x8x128xf32, #tpu.memory_space<vmem>>, %arg7: memref<16x128xf32, #tpu.memory_space<vmem>>, %arg8: memref<2x16x128xf32, #tpu.memory_space<vmem>>) attributes {dimension_semantics = [#tpu.dimension_semantics<parallel>, #tpu.dimension_semantics<arbitrary>], iteration_bounds = array<i64: 4, 2>, scalar_prefetch = 0 : i64, scratch_operands = 2 : i64, tpu.core_type = #tpu.core_type<tc>, window_params = [{transform_indices = @transform_0, window_bounds = array<i64: 2, 8, 128>}, {transform_indices = @transform_1, window_bounds = array<i64: 2, 8, 128>}, {pipeline_mode = #tpu.pipeline_mode<synchronous>, transform_indices = @transform_2, window_bounds = array<i64: 16, 128, 128>}, {transform_indices = @transform_3, window_bounds = array<i64: 2, 8, 128>}, {transform_indices = @transform_4, window_bounds = array<i64: 2, 8, 128>}]} {
    %c0_i32 = arith.constant 0 : i32
    %0 = arith.cmpi eq, %arg1, %c0_i32 : i32
    %1 = arith.extui %0 : i1 to i32
    %c0_i32_0 = arith.constant 0 : i32
    %2 = arith.cmpi ne, %1, %c0_i32_0 : i32
    scf.if %2 {
      %cst_65 = arith.constant 0.000000e+00 : f32
      %92 = vector.broadcast %cst_65 : f32 to vector<16x128xf32>
      %c0_66 = arith.constant 0 : index
      %c0_67 = arith.constant 0 : index
      %93 = vector.load %arg7[%c0_66, %c0_67] : memref<16x128xf32, #tpu.memory_space<vmem>>, vector<16x128xf32>
      tpu.vector_store %arg7[%c0_66, %c0_67], %92 {strides = array<i32>} : memref<16x128xf32, #tpu.memory_space<vmem>>, vector<16x128xf32>,
    } else {
    }
    %c0 = arith.constant 0 : index
    %c0_1 = arith.constant 0 : index
    %c0_2 = arith.constant 0 : index
    %3 = vector.load %arg2[%c0, %c0_1, %c0_2] : memref<2x8x128xf32, #tpu.memory_space<vmem>>, vector<2x8x128xf32>
    %c0_3 = arith.constant 0 : index
    %c0_4 = arith.constant 0 : index
    %c0_5 = arith.constant 0 : index
    %4 = vector.load %arg8[%c0_3, %c0_4, %c0_5] : memref<2x16x128xf32, #tpu.memory_space<vmem>>, vector<2x8x128xf32>
    tpu.vector_store %arg8[%c0_3, %c0_4, %c0_5], %3 {strides = array<i32>} : memref<2x16x128xf32, #tpu.memory_space<vmem>>, vector<2x8x128xf32>,
    %c0_6 = arith.constant 0 : index
    %c0_7 = arith.constant 0 : index
    %c0_8 = arith.constant 0 : index
    %5 = vector.load %arg3[%c0_6, %c0_7, %c0_8] : memref<2x8x128xf32, #tpu.memory_space<vmem>>, vector<2x8x128xf32>
    %c0_9 = arith.constant 0 : index
    %c8 = arith.constant 8 : index
    %c0_10 = arith.constant 0 : index
    %6 = vector.load %arg8[%c0_9, %c8, %c0_10] : memref<2x16x128xf32, #tpu.memory_space<vmem>>, vector<2x8x128xf32>
    tpu.vector_store %arg8[%c0_9, %c8, %c0_10], %5 {strides = array<i32>} : memref<2x16x128xf32, #tpu.memory_space<vmem>>, vector<2x8x128xf32>,
    %c0_11 = arith.constant 0 : index
    %c0_12 = arith.constant 0 : index
    %c0_13 = arith.constant 0 : index
    %7 = vector.load %arg8[%c0_11, %c0_12, %c0_13] : memref<2x16x128xf32, #tpu.memory_space<vmem>>, vector<2x8x128xf32>
    %8 = vector.shape_cast %7 : vector<2x8x128xf32> to vector<16x128xf32>
    %9 = arith.truncf %8 : vector<16x128xf32> to vector<16x128xbf16>
    %c8_i32 = arith.constant 8 : i32
    %10 = arith.muli %arg1, %c8_i32 : i32
    %c0_i32_14 = arith.constant 0 : i32
    %11 = arith.addi %10, %c0_i32_14 : i32
    %12 = arith.index_cast %11 : i32 to index
    %c0_15 = arith.constant 0 : index
    %c0_16 = arith.constant 0 : index
    %13 = vector.load %arg4[%12, %c0_15, %c0_16] : memref<16x128x128xbf16, #tpu.memory_space<vmem>>, vector<1x128x128xbf16>
    %14 = vector.shape_cast %13 : vector<1x128x128xbf16> to vector<128x128xbf16>
    %cst = arith.constant dense<0.000000e+00> : vector<16x128xf32>
    %15 = tpu.matmul %9, %14, %cst {dimension_numbers = #tpu.dot_dimension_numbers<[1], [0], [0], [1], [0, 0, 1, 1], [], []>} : vector<16x128xbf16>, vector<128x128xbf16>, vector<16x128xf32> -> vector<16x128xf32>
    %c0_17 = arith.constant 0 : index
    %c1 = arith.constant 1 : index
    %c0_18 = arith.constant 0 : index
    %16 = vector.load %arg8[%c0_17, %c1, %c0_18] : memref<2x16x128xf32, #tpu.memory_space<vmem>>, vector<2x8x128xf32>
    %17 = vector.shape_cast %16 : vector<2x8x128xf32> to vector<16x128xf32>
    %18 = arith.truncf %17 : vector<16x128xf32> to vector<16x128xbf16>
    %c8_i32_19 = arith.constant 8 : i32
    %19 = arith.muli %arg1, %c8_i32_19 : i32
    %c1_i32 = arith.constant 1 : i32
    %20 = arith.addi %19, %c1_i32 : i32
    %21 = arith.index_cast %20 : i32 to index
    %c0_20 = arith.constant 0 : index
    %c0_21 = arith.constant 0 : index
    %22 = vector.load %arg4[%21, %c0_20, %c0_21] : memref<16x128x128xbf16, #tpu.memory_space<vmem>>, vector<1x128x128xbf16>
    %23 = vector.shape_cast %22 : vector<1x128x128xbf16> to vector<128x128xbf16>
    %cst_22 = arith.constant dense<0.000000e+00> : vector<16x128xf32>
    %24 = tpu.matmul %18, %23, %cst_22 {dimension_numbers = #tpu.dot_dimension_numbers<[1], [0], [0], [1], [0, 0, 1, 1], [], []>} : vector<16x128xbf16>, vector<128x128xbf16>, vector<16x128xf32> -> vector<16x128xf32>
    %25 = arith.addf %15, %24 : vector<16x128xf32>
    %c0_23 = arith.constant 0 : index
    %c2 = arith.constant 2 : index
    %c0_24 = arith.constant 0 : index
    %26 = vector.load %arg8[%c0_23, %c2, %c0_24] : memref<2x16x128xf32, #tpu.memory_space<vmem>>, vector<2x8x128xf32>
    %27 = vector.shape_cast %26 : vector<2x8x128xf32> to vector<16x128xf32>
    %28 = arith.truncf %27 : vector<16x128xf32> to vector<16x128xbf16>
    %c8_i32_25 = arith.constant 8 : i32
    %29 = arith.muli %arg1, %c8_i32_25 : i32
    %c2_i32 = arith.constant 2 : i32
    %30 = arith.addi %29, %c2_i32 : i32
    %31 = arith.index_cast %30 : i32 to index
    %c0_26 = arith.constant 0 : index
    %c0_27 = arith.constant 0 : index
    %32 = vector.load %arg4[%31, %c0_26, %c0_27] : memref<16x128x128xbf16, #tpu.memory_space<vmem>>, vector<1x128x128xbf16>
    %33 = vector.shape_cast %32 : vector<1x128x128xbf16> to vector<128x128xbf16>
    %cst_28 = arith.constant dense<0.000000e+00> : vector<16x128xf32>
    %34 = tpu.matmul %28, %33, %cst_28 {dimension_numbers = #tpu.dot_dimension_numbers<[1], [0], [0], [1], [0, 0, 1, 1], [], []>} : vector<16x128xbf16>, vector<128x128xbf16>, vector<16x128xf32> -> vector<16x128xf32>
    %35 = arith.addf %25, %34 : vector<16x128xf32>
    %c0_29 = arith.constant 0 : index
    %c3 = arith.constant 3 : index
    %c0_30 = arith.constant 0 : index
    %36 = vector.load %arg8[%c0_29, %c3, %c0_30] : memref<2x16x128xf32, #tpu.memory_space<vmem>>, vector<2x8x128xf32>
    %37 = vector.shape_cast %36 : vector<2x8x128xf32> to vector<16x128xf32>
    %38 = arith.truncf %37 : vector<16x128xf32> to vector<16x128xbf16>
    %c8_i32_31 = arith.constant 8 : i32
    %39 = arith.muli %arg1, %c8_i32_31 : i32
    %c3_i32 = arith.constant 3 : i32
    %40 = arith.addi %39, %c3_i32 : i32
    %41 = arith.index_cast %40 : i32 to index
    %c0_32 = arith.constant 0 : index
    %c0_33 = arith.constant 0 : index
    %42 = vector.load %arg4[%41, %c0_32, %c0_33] : memref<16x128x128xbf16, #tpu.memory_space<vmem>>, vector<1x128x128xbf16>
    %43 = vector.shape_cast %42 : vector<1x128x128xbf16> to vector<128x128xbf16>
    %cst_34 = arith.constant dense<0.000000e+00> : vector<16x128xf32>
    %44 = tpu.matmul %38, %43, %cst_34 {dimension_numbers = #tpu.dot_dimension_numbers<[1], [0], [0], [1], [0, 0, 1, 1], [], []>} : vector<16x128xbf16>, vector<128x128xbf16>, vector<16x128xf32> -> vector<16x128xf32>
    %45 = arith.addf %35, %44 : vector<16x128xf32>
    %c0_35 = arith.constant 0 : index
    %c4 = arith.constant 4 : index
    %c0_36 = arith.constant 0 : index
    %46 = vector.load %arg8[%c0_35, %c4, %c0_36] : memref<2x16x128xf32, #tpu.memory_space<vmem>>, vector<2x8x128xf32>
    %47 = vector.shape_cast %46 : vector<2x8x128xf32> to vector<16x128xf32>
    %48 = arith.truncf %47 : vector<16x128xf32> to vector<16x128xbf16>
    %c8_i32_37 = arith.constant 8 : i32
    %49 = arith.muli %arg1, %c8_i32_37 : i32
    %c4_i32 = arith.constant 4 : i32
    %50 = arith.addi %49, %c4_i32 : i32
    %51 = arith.index_cast %50 : i32 to index
    %c0_38 = arith.constant 0 : index
    %c0_39 = arith.constant 0 : index
    %52 = vector.load %arg4[%51, %c0_38, %c0_39] : memref<16x128x128xbf16, #tpu.memory_space<vmem>>, vector<1x128x128xbf16>
    %53 = vector.shape_cast %52 : vector<1x128x128xbf16> to vector<128x128xbf16>
    %cst_40 = arith.constant dense<0.000000e+00> : vector<16x128xf32>
    %54 = tpu.matmul %48, %53, %cst_40 {dimension_numbers = #tpu.dot_dimension_numbers<[1], [0], [0], [1], [0, 0, 1, 1], [], []>} : vector<16x128xbf16>, vector<128x128xbf16>, vector<16x128xf32> -> vector<16x128xf32>
    %55 = arith.addf %45, %54 : vector<16x128xf32>
    %c0_41 = arith.constant 0 : index
    %c5 = arith.constant 5 : index
    %c0_42 = arith.constant 0 : index
    %56 = vector.load %arg8[%c0_41, %c5, %c0_42] : memref<2x16x128xf32, #tpu.memory_space<vmem>>, vector<2x8x128xf32>
    %57 = vector.shape_cast %56 : vector<2x8x128xf32> to vector<16x128xf32>
    %58 = arith.truncf %57 : vector<16x128xf32> to vector<16x128xbf16>
    %c8_i32_43 = arith.constant 8 : i32
    %59 = arith.muli %arg1, %c8_i32_43 : i32
    %c5_i32 = arith.constant 5 : i32
    %60 = arith.addi %59, %c5_i32 : i32
    %61 = arith.index_cast %60 : i32 to index
    %c0_44 = arith.constant 0 : index
    %c0_45 = arith.constant 0 : index
    %62 = vector.load %arg4[%61, %c0_44, %c0_45] : memref<16x128x128xbf16, #tpu.memory_space<vmem>>, vector<1x128x128xbf16>
    %63 = vector.shape_cast %62 : vector<1x128x128xbf16> to vector<128x128xbf16>
    %cst_46 = arith.constant dense<0.000000e+00> : vector<16x128xf32>
    %64 = tpu.matmul %58, %63, %cst_46 {dimension_numbers = #tpu.dot_dimension_numbers<[1], [0], [0], [1], [0, 0, 1, 1], [], []>} : vector<16x128xbf16>, vector<128x128xbf16>, vector<16x128xf32> -> vector<16x128xf32>
    %65 = arith.addf %55, %64 : vector<16x128xf32>
    %c0_47 = arith.constant 0 : index
    %c6 = arith.constant 6 : index
    %c0_48 = arith.constant 0 : index
    %66 = vector.load %arg8[%c0_47, %c6, %c0_48] : memref<2x16x128xf32, #tpu.memory_space<vmem>>, vector<2x8x128xf32>
    %67 = vector.shape_cast %66 : vector<2x8x128xf32> to vector<16x128xf32>
    %68 = arith.truncf %67 : vector<16x128xf32> to vector<16x128xbf16>
    %c8_i32_49 = arith.constant 8 : i32
    %69 = arith.muli %arg1, %c8_i32_49 : i32
    %c6_i32 = arith.constant 6 : i32
    %70 = arith.addi %69, %c6_i32 : i32
    %71 = arith.index_cast %70 : i32 to index
    %c0_50 = arith.constant 0 : index
    %c0_51 = arith.constant 0 : index
    %72 = vector.load %arg4[%71, %c0_50, %c0_51] : memref<16x128x128xbf16, #tpu.memory_space<vmem>>, vector<1x128x128xbf16>
    %73 = vector.shape_cast %72 : vector<1x128x128xbf16> to vector<128x128xbf16>
    %cst_52 = arith.constant dense<0.000000e+00> : vector<16x128xf32>
    %74 = tpu.matmul %68, %73, %cst_52 {dimension_numbers = #tpu.dot_dimension_numbers<[1], [0], [0], [1], [0, 0, 1, 1], [], []>} : vector<16x128xbf16>, vector<128x128xbf16>, vector<16x128xf32> -> vector<16x128xf32>
    %75 = arith.addf %65, %74 : vector<16x128xf32>
    %c0_53 = arith.constant 0 : index
    %c7 = arith.constant 7 : index
    %c0_54 = arith.constant 0 : index
    %76 = vector.load %arg8[%c0_53, %c7, %c0_54] : memref<2x16x128xf32, #tpu.memory_space<vmem>>, vector<2x8x128xf32>
    %77 = vector.shape_cast %76 : vector<2x8x128xf32> to vector<16x128xf32>
    %78 = arith.truncf %77 : vector<16x128xf32> to vector<16x128xbf16>
    %c8_i32_55 = arith.constant 8 : i32
    %79 = arith.muli %arg1, %c8_i32_55 : i32
    %c7_i32 = arith.constant 7 : i32
    %80 = arith.addi %79, %c7_i32 : i32
    %81 = arith.index_cast %80 : i32 to index
    %c0_56 = arith.constant 0 : index
    %c0_57 = arith.constant 0 : index
    %82 = vector.load %arg4[%81, %c0_56, %c0_57] : memref<16x128x128xbf16, #tpu.memory_space<vmem>>, vector<1x128x128xbf16>
    %83 = vector.shape_cast %82 : vector<1x128x128xbf16> to vector<128x128xbf16>
    %cst_58 = arith.constant dense<0.000000e+00> : vector<16x128xf32>
    %84 = tpu.matmul %78, %83, %cst_58 {dimension_numbers = #tpu.dot_dimension_numbers<[1], [0], [0], [1], [0, 0, 1, 1], [], []>} : vector<16x128xbf16>, vector<128x128xbf16>, vector<16x128xf32> -> vector<16x128xf32>
    %85 = arith.addf %75, %84 : vector<16x128xf32>
    %c0_59 = arith.constant 0 : index
    %c0_60 = arith.constant 0 : index
    %86 = vector.load %arg7[%c0_59, %c0_60] : memref<16x128xf32, #tpu.memory_space<vmem>>, vector<16x128xf32>
    %87 = arith.addf %86, %85 : vector<16x128xf32>
    %c0_61 = arith.constant 0 : index
    %c0_62 = arith.constant 0 : index
    %88 = vector.load %arg7[%c0_61, %c0_62] : memref<16x128xf32, #tpu.memory_space<vmem>>, vector<16x128xf32>
    tpu.vector_store %arg7[%c0_61, %c0_62], %87 {strides = array<i32>} : memref<16x128xf32, #tpu.memory_space<vmem>>, vector<16x128xf32>,
    %c1_i32_63 = arith.constant 1 : i32
    %89 = arith.cmpi eq, %arg1, %c1_i32_63 : i32
    %90 = arith.extui %89 : i1 to i32
    %c0_i32_64 = arith.constant 0 : i32
    %91 = arith.cmpi ne, %90, %c0_i32_64 : i32
    scf.if %91 {
      %c0_65 = arith.constant 0 : index
      %c0_66 = arith.constant 0 : index
      %c0_67 = arith.constant 0 : index
      %92 = vector.load %arg5[%c0_65, %c0_66, %c0_67] : memref<2x8x128xf32, #tpu.memory_space<vmem>>, vector<2x8x128xf32>
      %c0_68 = arith.constant 0 : index
      %c0_69 = arith.constant 0 : index
      %93 = vector.load %arg7[%c0_68, %c0_69] : memref<16x128xf32, #tpu.memory_space<vmem>>, vector<16x128xf32>
      %94 = vector.shape_cast %93 : vector<16x128xf32> to vector<2x8x128xf32>
      %95 = arith.addf %92, %94 : vector<2x8x128xf32>
      %c0_70 = arith.constant 0 : index
      %c0_71 = arith.constant 0 : index
      %c0_72 = arith.constant 0 : index
      %96 = vector.load %arg6[%c0_70, %c0_71, %c0_72] : memref<2x8x128xf32, #tpu.memory_space<vmem>>, vector<2x8x128xf32>
      tpu.vector_store %arg6[%c0_70, %c0_71, %c0_72], %95 {strides = array<i32>} : memref<2x8x128xf32, #tpu.memory_space<vmem>>, vector<2x8x128xf32>,
    } else {
    }
    return
  }
  func.func @transform_0(%arg0: i32, %arg1: i32) -> (i32, i32, i32) {
    %0 = arith.addi %arg0, %arg1 : i32
    %c0_i32 = arith.constant 0 : i32
    %c0_i32_0 = arith.constant 0 : i32
    %c0_i32_1 = arith.constant 0 : i32
    return %c0_i32, %0, %c0_i32_0 : i32, i32, i32
  }
  func.func @transform_1(%arg0: i32, %arg1: i32) -> (i32, i32, i32) {
    %0 = arith.addi %arg0, %arg1 : i32
    %c1_i32 = arith.constant 1 : i32
    %1 = arith.addi %0, %c1_i32 : i32
    %c0_i32 = arith.constant 0 : i32
    %c0_i32_0 = arith.constant 0 : i32
    %c0_i32_1 = arith.constant 0 : i32
    return %c0_i32, %1, %c0_i32_0 : i32, i32, i32
  }
  func.func @transform_2(%arg0: i32, %arg1: i32) -> (i32, i32, i32) {
    %c0_i32 = arith.constant 0 : i32
    %c0_i32_0 = arith.constant 0 : i32
    %c0_i32_1 = arith.constant 0 : i32
    %c0_i32_2 = arith.constant 0 : i32
    return %c0_i32, %c0_i32_0, %c0_i32_1 : i32, i32, i32
  }
  func.func @transform_3(%arg0: i32, %arg1: i32) -> (i32, i32, i32) {
    %c0_i32 = arith.constant 0 : i32
    %c0_i32_0 = arith.constant 0 : i32
    %c0_i32_1 = arith.constant 0 : i32
    return %c0_i32, %arg0, %c0_i32_0 : i32, i32, i32
  }
  func.func @transform_4(%arg0: i32, %arg1: i32) -> (i32, i32, i32) {
    %c0_i32 = arith.constant 0 : i32
    %c0_i32_0 = arith.constant 0 : i32
    %c0_i32_1 = arith.constant 0 : i32
    return %c0_i32, %arg0, %c0_i32_0 : i32, i32, i32
  }
}

</mosaic_0001>

<bundles_post_ra>
// kernel: tpu_custom_call.1
= control target key start
LH: loop header
LB: loop body
LE: loop exit
PB: predicated region body
PF: predicated region fallthrough
CT: control target
= control target key end

     0   :  { %s3077_s0 = inlined_call_operand.hbm [shape: f32[2,48,128], index: 0, kind: input, shape index: {}]   ;;  %s3078_s1 = inlined_call_operand.hbm [shape: f32[2,48,128], index: 1, kind: input, shape index: {}]   ;;  %s3079_s2 = inlined_call_operand.hbm [shape: bf16[16,128,128], index: 2, kind: input, shape index: {}]   ;;  %s3080_s3 = inlined_call_operand.hbm [shape: f32[2,32,128], index: 3, kind: input, shape index: {}]   ;;  %s3081_s4 = inlined_call_operand.hbm [shape: f32[2,32,128], index: 4, kind: output, shape index: {}]  }
   0x1   :  { %3100 = sst [smem:[#allocation26_spill]] %s3077_s0 }
   0x2   :  { %3101 = sst [smem:[#allocation27_spill]] %s3079_s2 }
   0x3   :  { %3102 = sst [smem:[#allocation28_spill]] %s3081_s4 }
   0x4   :  { %9 = vsyncpa [#allocation5], 0 }
   0x5   :  { %11 = vsyncpa [#allocation5 + $0x1], 0 }
   0x6   :  { %12 = vsyncpa [#allocation8], 0 }
   0x7   :  { %14 = vsyncpa [#allocation8 + $0x1], 0 }
   0x8   :  { %15 = vsyncpa [#allocation11], 0 }
   0x9   :  { %17 = vsyncpa [#allocation11 + $0x1], 0 }
   0xa   :  { %18 = vsyncpa [#allocation6], 0 }
   0xb   :  { %20 = vsyncpa [#allocation6 + $0x1], 0  ;;  %s2458_s15 = smov 0   ;;  %s2460_s16 = smov 0  }
   0xc   :  { %s2462_s17 = smov 0   ;;  %s2464_s18 = smov 0  }
   0xd   :  { %s2466_s19 = smov 0   ;;  %s2468_s20 = smov 0  }
   0xe   :  { %s2470_s21 = smov 0   ;;  %s2472_s22 = smov 0  }
   0xf   :  { %s2474_s23 = smov 0   ;;  %s2476_s24 = smov 0  }
  0x10   :  { %s2478_s25 = smov 0   ;;  %s2480_s26 = smov 0  }
  0x11   :  { %s2482_s27 = smov 0   ;;  %s2484_s28 = smov 0  }
  0x12 LB: > { %3103 = sst [smem:[#allocation18_spill]] %s2390_s22  ;;  %s2527_s29 = sadd.s32 4294967295, %s2414_s28   ;;  %s2414_s28 = sphi %s2484_s28, %s26_s28   ;;  %s2410_s27 = sphi %s2482_s27, %s3162_s27   ;;  %s2406_s26 = sphi %s2480_s26, %s3151_s26   ;;  %s2402_s25 = sphi %s2478_s25, %s3161_s25   ;;  %s2398_s24 = sphi %s2476_s24, %s3150_s24   ;;  %s2394_s23 = sphi %s2474_s23, %s3160_s23   ;;  %s2390_s22 = sphi %s2472_s22, %s3159_s22   ;;  %s2386_s21 = sphi %s2470_s21, %s3149_s21   ;;  %s2382_s20 = sphi %s2468_s20, %s3158_s20   ;;  %s2378_s19 = sphi %s2466_s19, %s3157_s19   ;;  %s2374_s18 = sphi %s2464_s18, %s3156_s18   ;;  %s2370_s17 = sphi %s2462_s17, %s3155_s17   ;;  %s2366_s16 = sphi %s2460_s16, %s3154_s16   ;;  %s2362_s15 = sphi %s2458_s15, %s3153_s15  }
  0x13   : > { %3104 = sst [smem:[#allocation19_spill]] %s2398_s24  ;;  %p90_p0 = scmp.ne.s32.totalorder %s2378_s19, %s2374_s18 }
  0x14   : > { %3105 = sst [smem:[#allocation20_spill]] %s2402_s25  ;;  %p3082_p1 = scmp.eq.s32.totalorder %s2527_s29, 0 }
  0x15   : > { %3106 = sst [smem:[#allocation21_spill]] %s2406_s26  ;;  %p1459_p3 = scmp.ge.s32.totalorder %s2414_s28, 1 }
  0x16   : > { %p174_p4 = scmp.lt.s32.totalorder %s2414_s28, 9  ;;  %p2536_p5 = por %p90_p0, %p3082_p1 }
  0x17   : > { %s2416_s6 = smov [#allocation9]   ;;  %s3111_s2 = sld [smem:[#allocation27_spill]] }
  0x18   : > { %s3107_s30 = scalar_select %p2536_p5, 1, 0 }
  0x19   : > { %p2540_p6 = pnand %p1459_p3, %p174_p4  ;;  %s186_s7 = sshll.u32 %s2416_s6, 4  ;;  %s187_s7 = int_to_ptr.vmem [resolvable:$true] %s186_s7 }
  0x1a   : > { %3108 = sst [smem:[#allocation22_spill]] %s3107_s30 }
  0x1b   : > { %s3109_s5 = scalar_select %p2540_p6, 1, 0 }
  0x1c   : > { %p1926_p7 = pneg %p2540_p6 }
  0x1d   : > { %s2137_s11 = scalar_lea.hbm %s3111_s2, 16384 }
  0x1e   : > { %p2548_p8 = pnand %p1926_p7, %p3082_p1  ;;  %p2138_p9 = scmp.ne.s32.totalorder %s3111_s2, %s2137_s11 }
  0x1f   : > { %p2144_p13 = scmp.lt.u32.totalorder %s2137_s11, %s3111_s2 }
  0x20   : > { %p2139_p10 = pneg %p2548_p8 }
  0x22   : > { %p2140_p11 = pnand %p2139_p10, %p2138_p9 }
  0x24   : > { %p2141_p12 = pneg %p2140_p11 }
  0x26   : > { %p2146_p0 = pnand %p2144_p13, %p2141_p12 }
  0x28   : > { %2149 = shalt.err (!%p2146_p0)
}
  0x29   : > { %s2150_s6 = scalar_lea.vmem %s187_s7, 16384  ;;  %p2158_p2 = scmp.lt.s32.totalorder %s187_s7, %s187_s7 }
  0x2a   : > { %p2151_p3 = scmp.ne.s32.totalorder %s187_s7, %s2150_s6  ;;  %p2159_p1 = scmp.lt.s32.totalorder %s2150_s6, %s2150_s6 }
  0x2c   : > { %p2153_p4 = pnand %p2151_p3, %p2139_p10  ;;  %p2160_p5 = por %p2159_p1, %p2158_p2 }
  0x2e   : > { %p2154_p7 = pneg %p2153_p4 }
  0x30   : > { %p2161_p6 = pnand %p2160_p5, %p2154_p7 }
  0x32   : > { %2164 = shalt.err (!%p2161_p6)
}
  0x33   : > { %s2417_s9 = smov 64   ;;  %s2418_s10 = smov 4  }
  0x34   : > { %1929 = dma.hbm_to_vmem [thread:$0]  (!%p2548_p8), %s3111_s2, 16384, %s187_s7, [#allocation8], %s2417_s9, %s2417_s9, %s2418_s10  }
  0x35   : > { %s35_s13 = sadd.s32 1, %s2406_s26  ;;  %s38_s14 = sadd.s32 1, %s2410_s27 }
  0x36   : > { %p36_p1 = scmp.ge.s32.totalorder %s35_s13, 2  ;;  %s2572_s18 = sadd.s32 %s2406_s26, %s2410_s27 }
  0x37   : > { %s47_s6 = sadd.s32 1, %s2394_s23  ;;  %p54_p2 = scmp.ne.s32.totalorder %s2394_s23, %s2390_s22 }
  0x38   : > { %s3164_s13 = smov (%p36_p1, %s35_s13), 0  ;;  %s3166_s14 = smov (!%p36_p1, %s38_s14), %s2410_s27 }
  0x39   : > { %3112 = sst [smem:[#allocation23_spill]] %s3164_s13  ;;  %p3095_p5 = scmp.eq.s32.totalorder %s2414_s28, 0 }
  0x3a   : > { %p60_p6 = scmp.ne.s32.totalorder %s2390_s22, %s2386_s21  ;;  %p40_p8 = scmp.ge.s32.totalorder %s3166_s14, 4 }
  0x3b   : > { %s71_s7 = sadd.s32 1, %s2572_s18  ;;  %p2586_p9 = por %p3095_p5, %p54_p2 }
  0x3c   : > { %p3114_p10 = scmp.eq.s32.totalorder %s2527_s29, 0  ;;  %s3168_s14 = smov (%p40_p8, %s3166_s14), 0 }
  0x3d   : > { %3117 = sst [smem:[#allocation25_spill]] %s3168_s14  ;;  %p3094_p12 = scmp.lt.s32.totalorder %s2414_s28, 8 }
  0x3e   : > { %p2592_p11 = por %p3114_p10, %p60_p6  ;;  %s200_s21 = sand.u32 1, %s2394_s23  }
  0x3f   : > { %s43_s10 = sadd.s32 %s3168_s14, %s3164_s13  ;;  %s121_s11 = ssub.s32 %s2410_s27, %s3168_s14 }
  0x40   : > { %s3115_s9 = scalar_select %p2592_p11, 1, 0 }
  0x41   : > { %s44_s12 = ssub.s32 %s2572_s18, %s43_s10  ;;  %s73_s2 = sadd.s32 1, %s43_s10 }
  0x42   : > { %3116 = sst [smem:[#allocation24_spill]] %s3115_s9  ;;  %p45_p13 = scmp.eq.s32.totalorder %s44_s12, 0 }
  0x43   : > { %s2605_s26 = ssub.s32 %s71_s7, %s73_s2  ;;  %p2608_p3 = scmp.eq.s32.totalorder %s121_s11, 0 }
  0x44   : > { %s2613_s25 = scalar_select %p45_p13, %s2394_s23, %s47_s6  }
  0x45   : > { %s1462_s24 = sshll.u32 %s200_s21, 4  ;;  %s1463_s30 = sshll.u32 %s2572_s18, 7 }
  0x46   : > { %s3119_s0 = sld [smem:[#allocation26_spill]]  ;;  %s204_s2 = scalar_lea.vmem [#allocation4], %s1462_s24 }
  0x47   : > { %s211_s7 = sshll.u32 %s204_s2, 4  ;;  %p2629_p4 = pnand %p3094_p12, %p2586_p9  ;;  %s2623_s7 = int_to_ptr.vmem [resolvable:$true] %s211_s7 }
  0x48   : > { %s2633_s10 = scalar_lea.sflag [#allocation5], %s200_s21 }
  0x49   : > { %p2167_p1 = pneg %p2629_p4 }
  0x4c   : > { %s2621_s14 = scalar_lea.hbm %s3119_s0, %s1463_s30  ;;  %s2170_s8 = scalar_lea.hbm %s3119_s0, 1536 }
  0x4d   : > { %s2165_s22 = scalar_lea.hbm %s2621_s14, 256  ;;  %p2171_p8 = scmp.lt.u32.totalorder %s2621_s14, %s3119_s0 }
  0x4e   : > { %p2166_p7 = scmp.ne.s32.totalorder %s2621_s14, %s2165_s22  ;;  %p2172_p9 = scmp.lt.u32.totalorder %s2170_s8, %s2165_s22 }
  0x4f   : > { %p2174_p13 = scmp.lt.u32.totalorder %s2165_s22, %s2621_s14 }
  0x50   : > { %p2168_p2 = pnand %p2167_p1, %p2166_p7  ;;  %p2173_p10 = por %p2172_p9, %p2171_p8 }
  0x52   : > { %p2169_p6 = pneg %p2168_p2  ;;  %p2175_p12 = por %p2174_p13, %p2173_p10 }
  0x54   : > { %p2176_p5 = pnand %p2175_p12, %p2169_p6 }
  0x56   : > { %2179 = shalt.err (!%p2176_p5)
}
  0x57   : > { %s2180_s21 = scalar_lea.vmem %s2623_s7, 256  ;;  %s2419_s2 = smov [#allocation4]  }
  0x58   : > { %p2181_p7 = scmp.ne.s32.totalorder %s2623_s7, %s2180_s21  ;;  %s2185_s24 = sshll.u32 %s2419_s2, 4  ;;  %s2186_s24 = int_to_ptr.vmem [resolvable:$false] %s2185_s24 }
  0x59   : > { %s2187_s9 = scalar_lea.vmem %s2186_s24, 512  ;;  %p2188_p11 = scmp.lt.s32.totalorder %s2623_s7, %s2186_s24 }
  0x5a   : > { %p2183_p2 = pnand %p2181_p7, %p2167_p1  ;;  %p2189_p8 = scmp.lt.s32.totalorder %s2187_s9, %s2180_s21 }
  0x5c   : > { %p2184_p0 = pneg %p2183_p2  ;;  %p2190_p9 = por %p2189_p8, %p2188_p11 }
  0x5e   : > { %p2191_p10 = pnand %p2190_p9, %p2184_p0 }
  0x60   : > { %2194 = shalt.err (!%p2191_p10)
}
  0x61   : > { %s3098_s22 = smov 768   ;;  %s2421_s8 = smov 128  }
  0x62   : > { %s2422_s11 = smov 8   ;;  %s1329_s2 = scalar_lea.hbm %s3078_s1, %s1463_s30 }
  0x63   : > { %1933 = dma.hbm_to_vmem [thread:$0]  (!%p2629_p4), %s2621_s14, 256, %s2623_s7, %s2633_s10, %s3098_s22, %s2421_s8, %s2422_s11  }
  0x64   : > { %s2669_s24 = scalar_lea.hbm %s1329_s2, 128  ;;  %s77_s9 = sadd.s32 1, %s2382_s20 }
  0x65   : > { %p84_p5 = scmp.ne.s32.totalorder %s2382_s20, %s2378_s19  ;;  %p3121_p11 = scmp.eq.s32.totalorder %s2605_s26, 0 }
  0x66   : > { %p3122_p12 = scmp.eq.s32.totalorder %s2414_s28, 0  ;;  %s221_s6 = sand.u32 1, %s2414_s28  }
  0x67   : > { %s2677_s0 = scalar_select %p3121_p11, %s2382_s20, %s77_s9  }
  0x68   : > { %p86_p0 = por %p84_p5, %p3122_p12  ;;  %s223_s13 = sand.u32 1, %s2382_s20  }
  0x69   : > { %s1464_s14 = sshll.u32 %s223_s13, 4  ;;  %p3123_p4 = scmp.lt.s32.totalorder %s2414_s28, 8 }
  0x6a   : > { %s225_s30 = scalar_lea.vmem [#allocation7], %s1464_s14  ;;  %s2691_s26 = scalar_lea.sflag [#allocation8], %s221_s6 }
  0x6b   : > { %p2685_p1 = pnand %p3123_p4, %p86_p0  ;;  %s233_s7 = sshll.u32 %s225_s30, 4  ;;  %s2689_s7 = int_to_ptr.vmem [resolvable:$true] %s233_s7 }
  0x6c   : > { %s2225_s10 = scalar_lea.hbm %s1329_s2, 384  ;;  %s2200_s21 = scalar_lea.hbm %s3078_s1, 1536 }
  0x6d   : > { %p2196_p6 = scmp.ne.s32.totalorder %s2669_s24, %s2225_s10  ;;  %p2197_p13 = pneg %p2685_p1 }
  0x6e   : > { %p2201_p8 = scmp.lt.u32.totalorder %s2669_s24, %s3078_s1  ;;  %p2202_p9 = scmp.lt.u32.totalorder %s2200_s21, %s2225_s10 }
  0x6f   : > { %p2198_p7 = pnand %p2197_p13, %p2196_p6  ;;  %p2204_p5 = scmp.lt.u32.totalorder %s2225_s10, %s2669_s24 }
  0x70   : > { %p2203_p10 = por %p2202_p9, %p2201_p8 }
  0x71   : > { %p2199_p2 = pneg %p2198_p7 }
  0x72   : > { %p2205_p11 = por %p2204_p5, %p2203_p10 }
  0x74   : > { %p2206_p12 = pnand %p2205_p11, %p2199_p2 }
  0x76   : > { %2209 = shalt.err (!%p2206_p12)
}
  0x77   : > { %s2210_s2 = scalar_lea.vmem %s2689_s7, 256  ;;  %s2423_s6 = smov [#allocation7]  }
  0x78   : > { %p2211_p0 = scmp.ne.s32.totalorder %s2689_s7, %s2210_s2  ;;  %s2215_s14 = sshll.u32 %s2423_s6, 4  ;;  %s2216_s14 = int_to_ptr.vmem [resolvable:$false] %s2215_s14 }
  0x79   : > { %s2217_s22 = scalar_lea.vmem %s2216_s14, 512  ;;  %p2218_p7 = scmp.lt.s32.totalorder %s2689_s7, %s2216_s14 }
  0x7a   : > { %p2213_p4 = pnand %p2211_p0, %p2197_p13  ;;  %p2219_p8 = scmp.lt.s32.totalorder %s2217_s22, %s2210_s2 }
  0x7c   : > { %p2214_p6 = pneg %p2213_p4  ;;  %p2220_p9 = por %p2219_p8, %p2218_p7 }
  0x7e   : > { %p2221_p10 = pnand %p2220_p9, %p2214_p6 }
  0x80   : > { %2224 = shalt.err (!%p2221_p10)
}
  0x81   : > { %s3125_s30 = smov 768   ;;  %s1458_s18 = sadd.s32 4294967294, %s2414_s28  }
  0x82   : > { %1936 = dma.hbm_to_vmem [thread:$0]  (!%p2685_p1), %s2669_s24, 256, %s2689_s7, %s2691_s26, %s3125_s30, %s2421_s8, %s2422_s11  }
  0x83   : > { %s124_s10 = sadd.s32 1, %s2370_s17  ;;  %p131_p13 = scmp.ne.s32.totalorder %s2370_s17, %s2366_s16 }
  0x84   : > { %s2726_s13 = scalar_select %p2608_p3, %s2370_s17, %s124_s10  }
  0x85   : > { %p137_p2 = scmp.ne.s32.totalorder %s2366_s16, %s2362_s15  ;;  %p167_p5 = scmp.eq.s32.totalorder %s1458_s18, 7 }
  0x86   : > { %s243_s12 = sand.u32 1, %s2370_s17   ;;  %p3126_p11 = scmp.eq.s32.totalorder %s2414_s28, 0 }
  0x87   : > { %p3127_p0 = scmp.eq.s32.totalorder %s2527_s29, 0  ;;  %p3129_p6 = scmp.eq.s32.totalorder %s2527_s29, 7 }
  0x88   : > { %p133_p12 = por %p131_p13, %p3126_p11  ;;  %p2747_p1 = por %p167_p5, %p137_p2 }
  0x89   : > { %p2737_p4 = por %p137_p2, %p3127_p0  ;;  %p2743_p7 = por %p3129_p6, %p131_p13 }
  0x8a   : > { %s3131_s4 = scalar_select %p2747_p1, 1, 0 }
  0x8b   : > { %s3130_s24 = scalar_select %p2743_p7, 1, 0 }
  0x8c   : > { %s1466_s7 = sshll.u32 %s243_s12, 4  ;;  %s1467_s26 = sshll.u32 %s2410_s27, 7 }
  0x8d   : > { %s2755_s6 = scalar_lea.hbm %s3080_s3, %s1467_s26  ;;  %s247_s14 = scalar_lea.vmem [#allocation10], %s1466_s7 }
  0x8e   : > { %s253_s22 = sshll.u32 %s247_s14, 4  ;;  %p3132_p3 = scmp.lt.s32.totalorder %s2414_s28, 8  ;;  %s2757_s22 = int_to_ptr.vmem [resolvable:$true] %s253_s22 }
  0x8f   : > { %s2765_s18 = scalar_lea.sflag [#allocation11], %s243_s12  ;;  %s2226_s10 = scalar_lea.hbm %s2755_s6, 256 }
  0x90   : > { %p2761_p8 = pnand %p3132_p3, %p133_p12  ;;  %p2227_p9 = scmp.ne.s32.totalorder %s2755_s6, %s2226_s10 }
  0x91   : > { %s2231_s9 = scalar_lea.hbm %s3080_s3, 1024  ;;  %p2232_p5 = scmp.lt.u32.totalorder %s2755_s6, %s3080_s3 }
  0x92   : > { %p2228_p10 = pneg %p2761_p8  ;;  %p2233_p11 = scmp.lt.u32.totalorder %s2231_s9, %s2226_s10 }
  0x93   : > { %p2235_p0 = scmp.lt.u32.totalorder %s2226_s10, %s2755_s6 }
  0x94   : > { %p2229_p13 = pnand %p2228_p10, %p2227_p9  ;;  %p2234_p12 = por %p2233_p11, %p2232_p5 }
  0x96   : > { %p2230_p2 = pneg %p2229_p13  ;;  %p2236_p6 = por %p2235_p0, %p2234_p12 }
  0x98   : > { %p2237_p3 = pnand %p2236_p6, %p2230_p2 }
  0x9a   : > { %2240 = shalt.err (!%p2237_p3)
}
  0x9b   : > { %s2241_s12 = scalar_lea.vmem %s2757_s22, 256  ;;  %s2424_s7 = smov [#allocation10]  }
  0x9c   : > { %p2242_p9 = scmp.ne.s32.totalorder %s2757_s22, %s2241_s12  ;;  %s2246_s26 = sshll.u32 %s2424_s7, 4  ;;  %s2247_s26 = int_to_ptr.vmem [resolvable:$false] %s2246_s26 }
  0x9d   : > { %s2248_s2 = scalar_lea.vmem %s2247_s26, 512  ;;  %p2249_p7 = scmp.lt.s32.totalorder %s2757_s22, %s2247_s26 }
  0x9e   : > { %p2244_p13 = pnand %p2242_p9, %p2228_p10  ;;  %p2250_p5 = scmp.lt.s32.totalorder %s2248_s2, %s2241_s12 }
  0xa0   : > { %p2245_p1 = pneg %p2244_p13  ;;  %p2251_p11 = por %p2250_p5, %p2249_p7 }
  0xa2   : > { %p2252_p12 = pnand %p2251_p11, %p2245_p1 }
  0xa4   : > { %2255 = shalt.err (!%p2252_p12)
}
  0xa5   : > { %s2425_s10 = smov 512   ;;  %p3134_p10 = scmp.ne.s32.totalorder %s3109_s5, 0 }
  0xa6   : > { %1939 = dma.hbm_to_vmem [thread:$0]  (!%p2761_p8), %s2755_s6, 256, %s2757_s22, %s2765_s18, %s2425_s10, %s2421_s8, %s2422_s11  }
  0xa7   : > { %265 = sbr.rel (%p3134_p10) target bundleno = 605 (0x25d), region = 36  ;;  %s3135_s9 = sld [smem:[#allocation18_spill]] (!%p3134_p10) }
  0xa8   : > { %s3136_s14 = sld [smem:[#allocation24_spill]] (!%p3134_p10) }
  0xad   : > { %s267_s7 = sand.u32 (!%p3134_p10), 1, %s3135_s9  }
  0xae   : > { %s2798_s26 = sshll.u32 %s267_s7, 4  ;;  %s268_s12 = scalar_lea.sflag [#allocation5], %s267_s7 }
  0xaf   : > { %s271_s2 = scalar_lea.vmem [#allocation4], %s2798_s26  ;;  %p3137_p7 = scmp.ne.s32.totalorder %s3136_s14, 0 }
  0xb1   : > { %2341 = dma.done.wait (%p3137_p7), %s268_s12, 256  }
  0xb2   : > { %2343 = vsyncadd (%p3137_p7), %s268_s12, 4294967040  ;;  %s3138_s30 = sld [smem:[#allocation22_spill]]  ;;  %s276_s8 = sand.u32 1, %s2527_s29  }
  0xb3   : > { %s278_s11 = sand.u32 1, %s2378_s19   ;;  %s277_s6 = scalar_lea.sflag [#allocation8], %s276_s8 }
  0xb4   : > { %s2807_s5 = sshll.u32 %s278_s11, 4 }
  0xb5   : > { %s280_s22 = scalar_lea.vmem [#allocation7], %s2807_s5 }
  0xb8   : > { %p3139_p1 = scmp.ne.s32.totalorder %s3138_s30, 0 }
  0xba   : > { %2345 = dma.done.wait (%p3139_p1), %s277_s6, 256  }
  0xbb   : > { %2347 = vsyncadd (%p3139_p1), %s277_s6, 4294967040  ;;  %p3140_p8 = scmp.eq.s32.totalorder %s2527_s29, 0 }
  0xbd   : > { %2349 = dma.done.wait (%p3140_p8), [#allocation8], 16384   ;;  %p3141_p2 = pmov %p3140_p8 }
  0xbe   : > { %s2819_s18 = sand.u32 1, %s2366_s16  }
  0xbf   : > { %2351 = vsyncadd (%p3141_p2), [#allocation8], 4294950912  ;;  %s1472_s10 = sshll.u32 %s2819_s18, 4  ;;  %s290_s9 = scalar_lea.sflag [#allocation11], %s2819_s18 }
  0xc0   : > { %s2823_s14 = scalar_lea.vmem [#allocation10], %s1472_s10 }
  0xc1   : > { %2353 = dma.done.wait (%p2737_p4), %s290_s9, 256  }
  0xc2   : > { %2355 = vsyncadd (%p2737_p4), %s290_s9, 4294967040  ;;  %s2829_s7 = scalar_lea.vmem [#allocation12], %s1472_s10  ;;  %s3142_s26 = sld [smem:[#allocation19_spill]] }
  0xc8   : > { %p1474_p0 = scmp.ne.s32.totalorder %s3142_s26, 0 }
  0xc9   : > { %v2426_v0 = vmov (!%p1474_p0), 0.0  }
  0xca   : > { %335 = sbr.rel (%p1474_p0) target bundleno = 209 (0xd1), region = 56  ;;  %336 = vst [vmem:[#allocation2] sm:$0xff] (!%p1474_p0), %v2426_v0  ;;  %337 = vst [vmem:[#allocation2 + $0x8] sm:$0xff] (!%p1474_p0), %v2426_v0 }
  0xd1 PF: > { %s3143_s29 = sld [smem:[#allocation19_spill]]  ;;  %v2833_v1 = vld [vmem:[%s271_s2] sm:$0xff]  ;;  %v2835_v2 = vld [vmem:[%s271_s2 + $0x8] sm:$0xff]  ;;  %v2427_v4 = vmov 0.0   ;;  %vm2428_vm0 = vmmov 0  }
  0xd2   : > { %v342_v3 = vld [vmem:[%s280_s22] sm:$0xff]  ;;  %1754 = vmatprep.subr.bf16.mxu0 %v2427_v4  ;;  %1774 = vmatprep.subr.bf16.mxu1 %v2427_v4  ;;  %340 = vst [vmem:[#allocation3] sm:$0xff] %v2833_v1  ;;  %341 = vst [vmem:[#allocation3 + $0x10] sm:$0xff] %v2835_v2  ;;  %v343_v5 = vld [vmem:[%s280_s22 + $0x8] sm:$0xff]  ;;  %v348_v25 = vpack.c.bf16 %v2835_v2, %v2833_v1 }
  0xd3   : > { %344 = vst [vmem:[#allocation3 + $0x8] sm:$0xff] %v342_v3  ;;  %1770 = vmatprep.mubr.msk.bf16.mxu0 %vm2428_vm0, %v2427_v4  ;;  %1790 = vmatprep.mubr.msk.bf16.mxu1 %vm2428_vm0, %v2427_v4  ;;  %345 = vst [vmem:[#allocation3 + $0x18] sm:$0xff] %v343_v5 }
  0xd7   : > { %s1674_s12 = sshll.u32 %s3143_s29, 9  ;;  %p1668_p4 = scmp.ne.s32.totalorder %s3143_s29, 1 }
  0xd8   : > { %s2841_s21 = scalar_lea.vmem [#allocation9], %s1674_s12 }
  0xd9   : > { %v2073_v6 = vld [vmem:[%s2841_s21 + $0x40] sm:$0xff]   ;;  %v2075_v8 = vld [vmem:[%s2841_s21 + $0x48] sm:$0xff]   ;;  %v2077_v10 = vld [vmem:[%s2841_s21 + $0x50] sm:$0xff]  }
  0xda   : > { %v2074_v7 = vld [vmem:[%s2841_s21] sm:$0xff]   ;;  %1755 = vmatpush3.bf16.msra.mxu0 %v2073_v6  ;;  %v2076_v9 = vld [vmem:[%s2841_s21 + $0x8] sm:$0xff]   ;;  %v2078_v11 = vld [vmem:[%s2841_s21 + $0x10] sm:$0xff]  }
  0xdb   : > { %1775 = vmatpush3.bf16.msra.mxu1 %v2074_v7  ;;  %1756 = vmatprep.subr.bf16.mxu0 %v2427_v4  ;;  %v2079_v12 = vld [vmem:[%s2841_s21 + $0x58] sm:$0xff]   ;;  %v2081_v14 = vld [vmem:[%s2841_s21 + $0x60] sm:$0xff]   ;;  %v2083_v16 = vld [vmem:[%s2841_s21 + $0x68] sm:$0xff]  }
  0xdc   : > { %1776 = vmatprep.subr.bf16.mxu1 %v2427_v4  ;;  %v2080_v13 = vld [vmem:[%s2841_s21 + $0x18] sm:$0xff]   ;;  %v2082_v15 = vld [vmem:[%s2841_s21 + $0x20] sm:$0xff]   ;;  %v2084_v17 = vld [vmem:[%s2841_s21 + $0x28] sm:$0xff]  }
  0xdd   : > { %v2085_v18 = vld [vmem:[%s2841_s21 + $0x70] sm:$0xff]   ;;  %v2087_v20 = vld [vmem:[%s2841_s21 + $0x78] sm:$0xff]   ;;  %v370_v22 = vld [vmem:[#allocation3 + $0x11] sm:$0xff] }
  0xde   : > { %1757 = vmatpush3.bf16.msra.mxu0 %v2075_v8  ;;  %v2086_v19 = vld [vmem:[%s2841_s21 + $0x30] sm:$0xff]   ;;  %v2088_v23 = vld [vmem:[%s2841_s21 + $0x38] sm:$0xff]   ;;  %v2089_v26 = vld [vmem:[%s2841_s21 + $0x80] sm:$0xff]  }
  0xdf   : > { %1777 = vmatpush3.bf16.msra.mxu1 %v2076_v9  ;;  %1758 = vmatprep.subr.bf16.mxu0 %v2427_v4  ;;  %v369_v21 = vld [vmem:[#allocation3 + $0x1] sm:$0xff]  ;;  %v2090_v27 = vld [vmem:[%s2841_s21 + $0xc0] sm:$0xff]   ;;  %v2091_v28 = vld [vmem:[%s2841_s21 + $0x88] sm:$0xff]  }
  0xe0   : > { %1778 = vmatprep.subr.bf16.mxu1 %v2427_v4  ;;  %v371_v24 = vpack.c.bf16 %v370_v22, %v369_v21  ;;  %v2092_v29 = vld [vmem:[%s2841_s21 + $0xc8] sm:$0xff]   ;;  %v2093_v30 = vld [vmem:[%s2841_s21 + $0x90] sm:$0xff]   ;;  %v2095_v32 = vld [vmem:[%s2841_s21 + $0x98] sm:$0xff]  }
  0xe1   : > { %v2094_v31 = vld [vmem:[%s2841_s21 + $0xd0] sm:$0xff]   ;;  %v2096_v33 = vld [vmem:[%s2841_s21 + $0xd8] sm:$0xff]   ;;  %v2097_v34 = vld [vmem:[%s2841_s21 + $0xa0] sm:$0xff]  }
  0xe2   : > { %1759 = vmatpush3.bf16.msra.mxu0 %v2077_v10  ;;  %v2098_v35 = vld [vmem:[%s2841_s21 + $0xe0] sm:$0xff]   ;;  %v2099_v36 = vld [vmem:[%s2841_s21 + $0xa8] sm:$0xff]   ;;  %v2101_v38 = vld [vmem:[%s2841_s21 + $0xb0] sm:$0xff]  }
  0xe3   : > { %1779 = vmatpush3.bf16.msra.mxu1 %v2078_v11  ;;  %1760 = vmatprep.subr.bf16.mxu0 %v2427_v4  ;;  %v2100_v37 = vld [vmem:[%s2841_s21 + $0xe8] sm:$0xff]   ;;  %v2102_v39 = vld [vmem:[%s2841_s21 + $0xf0] sm:$0xff]   ;;  %v2103_v40 = vld [vmem:[%s2841_s21 + $0xb8] sm:$0xff]  }
  0xe4   : > { %1780 = vmatprep.subr.bf16.mxu1 %v2427_v4  ;;  %v570_v41 = vld [vmem:[#allocation3 + $0x2] sm:$0xff]  ;;  %v571_v43 = vld [vmem:[#allocation3 + $0x12] sm:$0xff] }
  0xe5   : > { %v2104_v42 = vld [vmem:[%s2841_s21 + $0xf8] sm:$0xff]   ;;  %v685_v45 = vld [vmem:[#allocation3 + $0x13] sm:$0xff]  ;;  %v572_v46 = vpack.c.bf16 %v571_v43, %v570_v41  ;;  %v2109_v52 = vld [vmem:[%s2841_s21 + $0x110] sm:$0xff]  }
  0xe6   : > { %1761 = vmatpush3.bf16.msra.mxu0 %v2079_v12  ;;  %v684_v44 = vld [vmem:[#allocation3 + $0x3] sm:$0xff]  ;;  %v2105_v48 = vld [vmem:[%s2841_s21 + $0x100] sm:$0xff]   ;;  %v2107_v50 = vld [vmem:[%s2841_s21 + $0x108] sm:$0xff]  }
  0xe7   : > { %1781 = vmatpush3.bf16.msra.mxu1 %v2080_v13  ;;  %1762 = vmatprep.subr.bf16.mxu0 %v2427_v4  ;;  %v686_v47 = vpack.c.bf16 %v685_v45, %v684_v44  ;;  %v2106_v49 = vld [vmem:[%s2841_s21 + $0x140] sm:$0xff]   ;;  %v2108_v51 = vld [vmem:[%s2841_s21 + $0x148] sm:$0xff]   ;;  %v2110_v53 = vld [vmem:[%s2841_s21 + $0x150] sm:$0xff]  }
  0xe8   : > { %1782 = vmatprep.subr.bf16.mxu1 %v2427_v4  ;;  %v2111_v54 = vld [vmem:[%s2841_s21 + $0x118] sm:$0xff]   ;;  %v2113_v56 = vld [vmem:[%s2841_s21 + $0x120] sm:$0xff]   ;;  %v2115_v58 = vld [vmem:[%s2841_s21 + $0x128] sm:$0xff]  }
  0xe9   : > { %v2112_v55 = vld [vmem:[%s2841_s21 + $0x158] sm:$0xff]   ;;  %v2114_v57 = vld [vmem:[%s2841_s21 + $0x160] sm:$0xff]   ;;  %v2116_v59 = vld [vmem:[%s2841_s21 + $0x168] sm:$0xff]  }
  0xea   : > { %1763 = vmatpush3.bf16.msra.mxu0 %v2081_v14  ;;  %v2117_v60 = vld [vmem:[%s2841_s21 + $0x130] sm:$0xff]   ;;  %v2119_v62 = vld [vmem:[%s2841_s21 + $0x138] sm:$0xff]   ;;  %v799_v0 = vld [vmem:[#allocation3 + $0x14] sm:$0xff] }
  0xeb   : > { %1783 = vmatpush3.bf16.msra.mxu1 %v2082_v15  ;;  %1764 = vmatprep.subr.bf16.mxu0 %v2427_v4  ;;  %v2118_v61 = vld [vmem:[%s2841_s21 + $0x170] sm:$0xff]   ;;  %v2120_v1 = vld [vmem:[%s2841_s21 + $0x178] sm:$0xff]   ;;  %v913_v3 = vld [vmem:[#allocation3 + $0x15] sm:$0xff] }
  0xec   : > { %1784 = vmatprep.subr.bf16.mxu1 %v2427_v4  ;;  %v798_v63 = vld [vmem:[#allocation3 + $0x4] sm:$0xff]  ;;  %v2121_v7 = vld [vmem:[%s2841_s21 + $0x180] sm:$0xff]   ;;  %v2123_v9 = vld [vmem:[%s2841_s21 + $0x188] sm:$0xff]  }
  0xed   : > { %v912_v2 = vld [vmem:[#allocation3 + $0x5] sm:$0xff]  ;;  %v800_v5 = vpack.c.bf16 %v799_v0, %v798_v63  ;;  %v2122_v8 = vld [vmem:[%s2841_s21 + $0x1c0] sm:$0xff]   ;;  %v2124_v10 = vld [vmem:[%s2841_s21 + $0x1c8] sm:$0xff]  }
  0xee   : > { %1765 = vmatpush3.bf16.msra.mxu0 %v2083_v16  ;;  %v914_v6 = vpack.c.bf16 %v913_v3, %v912_v2  ;;  %v2125_v11 = vld [vmem:[%s2841_s21 + $0x190] sm:$0xff]   ;;  %v2127_v13 = vld [vmem:[%s2841_s21 + $0x198] sm:$0xff]   ;;  %v2129_v15 = vld [vmem:[%s2841_s21 + $0x1a0] sm:$0xff]  }
  0xef   : > { %1785 = vmatpush3.bf16.msra.mxu1 %v2084_v17  ;;  %1766 = vmatprep.subr.bf16.mxu0 %v2427_v4  ;;  %v2126_v12 = vld [vmem:[%s2841_s21 + $0x1d0] sm:$0xff]   ;;  %v2128_v14 = vld [vmem:[%s2841_s21 + $0x1d8] sm:$0xff]   ;;  %v2130_v16 = vld [vmem:[%s2841_s21 + $0x1e0] sm:$0xff]  }
  0xf0   : > { %1786 = vmatprep.subr.bf16.mxu1 %v2427_v4  ;;  %v2131_v17 = vld [vmem:[%s2841_s21 + $0x1a8] sm:$0xff]   ;;  %v2135_v21 = vld [vmem:[%s2841_s21 + $0x1b8] sm:$0xff]   ;;  %v1254_v2 = vld [vmem:[#allocation2] sm:$0xff] }
  0xf1   : > { %v1026_v22 = vld [vmem:[#allocation3 + $0x6] sm:$0xff] }
  0xf2   : > { %1767 = vmatpush3.bf16.msra.mxu0 %v2085_v18  ;;  %v2132_v18 = vld [vmem:[%s2841_s21 + $0x1e8] sm:$0xff]  }
  0xf3   : > { %1787 = vmatpush3.bf16.msra.mxu1 %v2086_v19  ;;  %1768 = vmatprep.subr.bf16.mxu0 %v2427_v4  ;;  %v2133_v19 = vld [vmem:[%s2841_s21 + $0x1b0] sm:$0xff]  }
  0xf4   : > { %1788 = vmatprep.subr.bf16.mxu1 %v2427_v4 }
  0xf6   : > { %1769 = vmatpush3.bf16.msra.mxu0 %v2087_v20  ;;  %v2134_v20 = vld [vmem:[%s2841_s21 + $0x1f0] sm:$0xff]  }
  0xf7   : > { %1789 = vmatpush3.bf16.msra.mxu1 %v2088_v23  ;;  %1794 = vmatprep.subr.bf16.mxu0 %v2427_v4  ;;  %v1027_v23 = vld [vmem:[#allocation3 + $0x16] sm:$0xff] }
  0xf8   : > { %1814 = vmatprep.subr.bf16.mxu1 %v2427_v4 }
  0xf9   : > { %1771 = vmatmul.mubr.bf16.vlgmr.msra.gmra.mrb[0].mxu0 %v371_v24  ;;  %v2136_v24 = vld [vmem:[%s2841_s21 + $0x1f8] sm:$0xff]  }
  0xfa   : > { %1791 = vmatmul.mubr.bf16.vlgmr.msra.gmra.mrb[0].mxu1 %v348_v25  ;;  %1795 = vmatpush3.bf16.msra.mxu0 %v2089_v26  ;;  %v1140_v25 = vld [vmem:[#allocation3 + $0x7] sm:$0xff]  ;;  %v1141_v26 = vld [vmem:[#allocation3 + $0x17] sm:$0xff] }
  0xfb   : > { %1815 = vmatpush3.bf16.msra.mxu1 %v2090_v27  ;;  %1796 = vmatprep.subr.bf16.mxu0 %v2427_v4  ;;  %v1028_v27 = vpack.c.bf16 %v1027_v23, %v1026_v22 }
  0xfc   : > { %1816 = vmatprep.subr.bf16.mxu1 %v2427_v4  ;;  %1810 = vmatprep.mubr.msk.bf16.mxu0 %vm2428_vm0, %v2427_v4 }
  0xfd   : > { %1830 = vmatprep.mubr.msk.bf16.mxu1 %vm2428_vm0, %v2427_v4 }
  0xfe   : > { %1797 = vmatpush3.bf16.msra.mxu0 %v2091_v28  ;;  %v1142_v28 = vpack.c.bf16 %v1141_v26, %v1140_v25 }
  0xff   : > { %1817 = vmatpush3.bf16.msra.mxu1 %v2092_v29  ;;  %1798 = vmatprep.subr.bf16.mxu0 %v2427_v4 }
 0x100   : > { %1818 = vmatprep.subr.bf16.mxu1 %v2427_v4 }
 0x102   : > { %1799 = vmatpush3.bf16.msra.mxu0 %v2093_v30 }
 0x103   : > { %1819 = vmatpush3.bf16.msra.mxu1 %v2094_v31  ;;  %1800 = vmatprep.subr.bf16.mxu0 %v2427_v4 }
 0x104   : > { %1820 = vmatprep.subr.bf16.mxu1 %v2427_v4 }
 0x106   : > { %1801 = vmatpush3.bf16.msra.mxu0 %v2095_v32 }
 0x107   : > { %1821 = vmatpush3.bf16.msra.mxu1 %v2096_v33  ;;  %1802 = vmatprep.subr.bf16.mxu0 %v2427_v4 }
 0x108   : > { %1822 = vmatprep.subr.bf16.mxu1 %v2427_v4 }
 0x10a   : > { %1803 = vmatpush3.bf16.msra.mxu0 %v2097_v34 }
 0x10b   : > { %1823 = vmatpush3.bf16.msra.mxu1 %v2098_v35  ;;  %1804 = vmatprep.subr.bf16.mxu0 %v2427_v4 }
 0x10c   : > { %1824 = vmatprep.subr.bf16.mxu1 %v2427_v4 }
 0x10e   : > { %1805 = vmatpush3.bf16.msra.mxu0 %v2099_v36 }
 0x10f   : > { %1825 = vmatpush3.bf16.msra.mxu1 %v2100_v37  ;;  %1806 = vmatprep.subr.bf16.mxu0 %v2427_v4 }
 0x110   : > { %1826 = vmatprep.subr.bf16.mxu1 %v2427_v4 }
 0x112   : > { %1807 = vmatpush3.bf16.msra.mxu0 %v2101_v38 }
 0x113   : > { %1827 = vmatpush3.bf16.msra.mxu1 %v2102_v39  ;;  %1808 = vmatprep.subr.bf16.mxu0 %v2427_v4 }
 0x114   : > { %1828 = vmatprep.subr.bf16.mxu1 %v2427_v4 }
 0x116   : > { %1809 = vmatpush3.bf16.msra.mxu0 %v2103_v40 }
 0x117   : > { %1829 = vmatpush3.bf16.msra.mxu1 %v2104_v42  ;;  %1834 = vmatprep.subr.bf16.mxu0 %v2427_v4 }
 0x118   : > { %1854 = vmatprep.subr.bf16.mxu1 %v2427_v4 }
 0x119   : > { %1811 = vmatmul.mubr.bf16.vlgmr.msra.gmra.mrb[4].mxu0 %v572_v46 }
 0x11a   : > { %1831 = vmatmul.mubr.bf16.vlgmr.msra.gmra.mrb[4].mxu1 %v686_v47  ;;  %1835 = vmatpush3.bf16.msra.mxu0 %v2105_v48 }
 0x11b   : > { %1855 = vmatpush3.bf16.msra.mxu1 %v2106_v49  ;;  %1836 = vmatprep.subr.bf16.mxu0 %v2427_v4 }
 0x11c   : > { %1856 = vmatprep.subr.bf16.mxu1 %v2427_v4  ;;  %1850 = vmatprep.mubr.msk.bf16.mxu0 %vm2428_vm0, %v2427_v4 }
 0x11d   : > { %1870 = vmatprep.mubr.msk.bf16.mxu1 %vm2428_vm0, %v2427_v4 }
 0x11e   : > { %1837 = vmatpush3.bf16.msra.mxu0 %v2107_v50 }
 0x11f   : > { %1857 = vmatpush3.bf16.msra.mxu1 %v2108_v51  ;;  %1838 = vmatprep.subr.bf16.mxu0 %v2427_v4 }
 0x120   : > { %1858 = vmatprep.subr.bf16.mxu1 %v2427_v4 }
 0x122   : > { %1839 = vmatpush3.bf16.msra.mxu0 %v2109_v52 }
 0x123   : > { %1859 = vmatpush3.bf16.msra.mxu1 %v2110_v53  ;;  %1840 = vmatprep.subr.bf16.mxu0 %v2427_v4 }
 0x124   : > { %1860 = vmatprep.subr.bf16.mxu1 %v2427_v4 }
 0x126   : > { %1841 = vmatpush3.bf16.msra.mxu0 %v2111_v54 }
 0x127   : > { %1861 = vmatpush3.bf16.msra.mxu1 %v2112_v55  ;;  %1842 = vmatprep.subr.bf16.mxu0 %v2427_v4 }
 0x128   : > { %1862 = vmatprep.subr.bf16.mxu1 %v2427_v4 }
 0x12a   : > { %1843 = vmatpush3.bf16.msra.mxu0 %v2113_v56 }
 0x12b   : > { %1863 = vmatpush3.bf16.msra.mxu1 %v2114_v57  ;;  %1844 = vmatprep.subr.bf16.mxu0 %v2427_v4 }
 0x12c   : > { %1864 = vmatprep.subr.bf16.mxu1 %v2427_v4 }
 0x12e   : > { %1845 = vmatpush3.bf16.msra.mxu0 %v2115_v58 }
 0x12f   : > { %1865 = vmatpush3.bf16.msra.mxu1 %v2116_v59  ;;  %1846 = vmatprep.subr.bf16.mxu0 %v2427_v4 }
 0x130   : > { %1866 = vmatprep.subr.bf16.mxu1 %v2427_v4 }
 0x132   : > { %1847 = vmatpush3.bf16.msra.mxu0 %v2117_v60 }
 0x133   : > { %1867 = vmatpush3.bf16.msra.mxu1 %v2118_v61  ;;  %1848 = vmatprep.subr.bf16.mxu0 %v2427_v4 }
 0x134   : > { %1868 = vmatprep.subr.bf16.mxu1 %v2427_v4 }
 0x136   : > { %1849 = vmatpush3.bf16.msra.mxu0 %v2119_v62 }
 0x137   : > { %1869 = vmatpush3.bf16.msra.mxu1 %v2120_v1  ;;  %1874 = vmatprep.subr.bf16.mxu0 %v2427_v4 }
 0x138   : > { %1894 = vmatprep.subr.bf16.mxu1 %v2427_v4 }
 0x139   : > { %1851 = vmatmul.mubr.bf16.vlgmr.msra.gmra.mrb[8].mxu0 %v800_v5 }
 0x13a   : > { %1871 = vmatmul.mubr.bf16.vlgmr.msra.gmra.mrb[8].mxu1 %v914_v6  ;;  %1875 = vmatpush3.bf16.msra.mxu0 %v2121_v7 }
 0x13b   : > { %1895 = vmatpush3.bf16.msra.mxu1 %v2122_v8  ;;  %1876 = vmatprep.subr.bf16.mxu0 %v2427_v4 }
 0x13c   : > { %1896 = vmatprep.subr.bf16.mxu1 %v2427_v4  ;;  %1890 = vmatprep.mubr.msk.bf16.mxu0 %vm2428_vm0, %v2427_v4 }
 0x13d   : > { %1910 = vmatprep.mubr.msk.bf16.mxu1 %vm2428_vm0, %v2427_v4 }
 0x13e   : > { %1877 = vmatpush3.bf16.msra.mxu0 %v2123_v9 }
 0x13f   : > { %1897 = vmatpush3.bf16.msra.mxu1 %v2124_v10  ;;  %1878 = vmatprep.subr.bf16.mxu0 %v2427_v4  ;;  %v1255_v10 = vld [vmem:[#allocation2 + $0x8] sm:$0xff] }
 0x140   : > { %1898 = vmatprep.subr.bf16.mxu1 %v2427_v4 }
 0x142   : > { %1879 = vmatpush3.bf16.msra.mxu0 %v2125_v11 }
 0x143   : > { %1899 = vmatpush3.bf16.msra.mxu1 %v2126_v12  ;;  %1880 = vmatprep.subr.bf16.mxu0 %v2427_v4 }
 0x144   : > { %1900 = vmatprep.subr.bf16.mxu1 %v2427_v4 }
 0x146   : > { %1881 = vmatpush3.bf16.msra.mxu0 %v2127_v13 }
 0x147   : > { %1901 = vmatpush3.bf16.msra.mxu1 %v2128_v14  ;;  %1882 = vmatprep.subr.bf16.mxu0 %v2427_v4 }
 0x148   : > { %1902 = vmatprep.subr.bf16.mxu1 %v2427_v4 }
 0x14a   : > { %1883 = vmatpush3.bf16.msra.mxu0 %v2129_v15  ;;  %v1264_v15 = vld [vmem:[%s2823_s14] sm:$0xff] (!%p1668_p4) }
 0x14b   : > { %1903 = vmatpush3.bf16.msra.mxu1 %v2130_v16  ;;  %1884 = vmatprep.subr.bf16.mxu0 %v2427_v4 }
 0x14c   : > { %1904 = vmatprep.subr.bf16.mxu1 %v2427_v4 }
 0x14e   : > { %1885 = vmatpush3.bf16.msra.mxu0 %v2131_v17  ;;  %v1265_v17 = vld [vmem:[%s2823_s14 + $0x8] sm:$0xff] (!%p1668_p4) }
 0x14f   : > { %1905 = vmatpush3.bf16.msra.mxu1 %v2132_v18  ;;  %1886 = vmatprep.subr.bf16.mxu0 %v2427_v4 }
 0x150   : > { %1906 = vmatprep.subr.bf16.mxu1 %v2427_v4 }
 0x152   : > { %1887 = vmatpush3.bf16.msra.mxu0 %v2133_v19 }
 0x153   : > { %1907 = vmatpush3.bf16.msra.mxu1 %v2134_v20  ;;  %1888 = vmatprep.subr.bf16.mxu0 %v2427_v4 }
 0x154   : > { %1908 = vmatprep.subr.bf16.mxu1 %v2427_v4 }
 0x156   : > { %1889 = vmatpush3.bf16.msra.mxu0 %v2135_v21 }
 0x157   : > { %1909 = vmatpush3.bf16.msra.mxu1 %v2136_v24 }
 0x159   : > { %1891 = vmatmul.mubr.bf16.vlgmr.msra.gmra.mrb[12].mxu0 %v1028_v27 }
 0x15a   : > { %1911 = vmatmul.mubr.bf16.vlgmr.msra.gmra.mrb[12].mxu1 %v1142_v28 }
 0x1cc   : > { %v474_v29 = vpop.f32.mrb[0].mxu0 }
 0x1cd   : > { %v563_v30 = vpop.f32.mrb[0].mxu1  ;;  %v1772_v31 = vpop.f32.mrb[1].mxu0 }
 0x1ce   : > { %v564_v32 = vadd.f32 %v563_v30, %v474_v29  ;;  %v1792_v33 = vpop.f32.mrb[1].mxu1  ;;  %v477_v34 = vpop.f32.mrb[2].mxu0 }
 0x1cf   : > { %v566_v35 = vpop.f32.mrb[2].mxu1  ;;  %v1773_v36 = vpop.f32.mrb[3].mxu0 }
 0x1d0   : > { %v567_v37 = vadd.f32 %v566_v35, %v477_v34  ;;  %v1793_v38 = vpop.f32.mrb[3].mxu1 }
 0x1ec   : > { %v675_v39 = vpop.f32.mrb[4].mxu0 }
 0x1ed   : > { %v682_v40 = vadd.f32 %v675_v39, %v564_v32  ;;  %v789_v41 = vpop.f32.mrb[4].mxu1  ;;  %v1812_v4 = vpop.f32.mrb[5].mxu0 }
 0x1ee   : > { %v1832_v42 = vpop.f32.mrb[5].mxu1  ;;  %v678_v43 = vpop.f32.mrb[6].mxu0 }
 0x1ef   : > { %v796_v44 = vadd.f32 %v789_v41, %v682_v40  ;;  %v683_v45 = vadd.f32 %v678_v43, %v567_v37  ;;  %v792_v46 = vpop.f32.mrb[6].mxu1  ;;  %v1813_v47 = vpop.f32.mrb[7].mxu0 }
 0x1f0   : > { %v1833_v48 = vpop.f32.mrb[7].mxu1 }
 0x1f1   : > { %v797_v49 = vadd.f32 %v792_v46, %v683_v45 }
 0x20c   : > { %v903_v50 = vpop.f32.mrb[8].mxu0 }
 0x20d   : > { %v910_v51 = vadd.f32 %v903_v50, %v796_v44  ;;  %v1017_v52 = vpop.f32.mrb[8].mxu1  ;;  %v1852_v53 = vpop.f32.mrb[9].mxu0 }
 0x20e   : > { %v1872_v54 = vpop.f32.mrb[9].mxu1  ;;  %v906_v55 = vpop.f32.mrb[10].mxu0 }
 0x20f   : > { %v1024_v56 = vadd.f32 %v1017_v52, %v910_v51  ;;  %v911_v57 = vadd.f32 %v906_v55, %v797_v49  ;;  %v1020_v58 = vpop.f32.mrb[10].mxu1  ;;  %v1853_v59 = vpop.f32.mrb[11].mxu0 }
 0x210   : > { %v1873_v60 = vpop.f32.mrb[11].mxu1 }
 0x211   : > { %v1025_v61 = vadd.f32 %v1020_v58, %v911_v57 }
 0x22c   : > { %v1131_v62 = vpop.f32.mrb[12].mxu0 }
 0x22d   : > { %v1138_v63 = vadd.f32 %v1131_v62, %v1024_v56  ;;  %v1245_v0 = vpop.f32.mrb[12].mxu1  ;;  %v1892_v1 = vpop.f32.mrb[13].mxu0 }
 0x22e   : > { %v1912_v3 = vpop.f32.mrb[13].mxu1  ;;  %v1134_v5 = vpop.f32.mrb[14].mxu0 }
 0x22f   : > { %v1252_v6 = vadd.f32 %v1245_v0, %v1138_v63  ;;  %v1139_v7 = vadd.f32 %v1134_v5, %v1025_v61  ;;  %v1248_v8 = vpop.f32.mrb[14].mxu1  ;;  %v1893_v9 = vpop.f32.mrb[15].mxu0  ;;  %1263 = sbr.rel (%p1668_p4) target bundleno = 576 (0x240), region = 60 }
 0x230   : > { %v1913_v11 = vpop.f32.mrb[15].mxu1 }
 0x231   : > { %v1256_v12 = vadd.f32 %v1254_v2, %v1252_v6  ;;  %v1253_v13 = vadd.f32 %v1248_v8, %v1139_v7 }
 0x233   : > { %1258 = vst [vmem:[#allocation2] sm:$0xff] %v1256_v12  ;;  %v1257_v14 = vadd.f32 %v1255_v10, %v1253_v13 }
 0x235   : > { %1259 = vst [vmem:[#allocation2 + $0x8] sm:$0xff] %v1257_v14 }
 0x23a   : > { %v1266_v16 = vld [vmem:[#allocation2] sm:$0xff] }
 0x23b   : > { %v1268_v18 = vadd.f32 %v1266_v16, %v1264_v15 }
 0x23c   : > { %v1267_v19 = vld [vmem:[#allocation2 + $0x8] sm:$0xff] }
 0x23d   : > { %v1269_v20 = vadd.f32 %v1267_v19, %v1265_v17  ;;  %1270 = vst [vmem:[%s2829_s7] sm:$0xff] %v1268_v18 }
 0x23f   : > { %1271 = vst [vmem:[%s2829_s7 + $0x8] sm:$0xff] %v1269_v20 }
 0x240 PF: > { %s3144_s2 = sld [smem:[#allocation20_spill]]  ;;  %s3145_s5 = sld [smem:[#allocation28_spill]] }
 0x241   : > { %s1285_s22 = sshll.u32 %s2829_s7, 4  ;;  %s1273_s10 = scalar_lea.sflag [#allocation6], %s2819_s18  ;;  %s2999_s22 = int_to_ptr.vmem [resolvable:$true] %s1285_s22 }
 0x242   : > { %s2256_s9 = scalar_lea.vmem %s2999_s22, 256  ;;  %p3146_p3 = scmp.ne.s32.totalorder %s3130_s24, 0 }
 0x243   : > { %p2257_p6 = scmp.ne.s32.totalorder %s2999_s22, %s2256_s9  ;;  %s2429_s14 = smov [#allocation12]  }
 0x244   : > { %s2260_s26 = sshll.u32 %s2429_s14, 4  ;;  %s2261_s26 = int_to_ptr.vmem [resolvable:$false] %s2260_s26 }
 0x245   : > { %p2258_p9 = pnand %p2257_p6, %p3146_p3  ;;  %s2262_s29 = scalar_lea.vmem %s2261_s26, 512 }
 0x246   : > { %s1670_s30 = sshll.u32 %s3144_s2, 7  ;;  %p2263_p5 = scmp.lt.s32.totalorder %s2999_s22, %s2261_s26 }
 0x247   : > { %s2996_s6 = scalar_lea.hbm %s3145_s5, %s1670_s30  ;;  %p2259_p13 = pneg %p2258_p9 }
 0x248   : > { %p2264_p11 = scmp.lt.s32.totalorder %s2262_s29, %s2256_s9 }
 0x24a   : > { %p2265_p12 = por %p2264_p11, %p2263_p5 }
 0x24c   : > { %p2266_p10 = pnand %p2265_p12, %p2259_p13 }
 0x24e   : > { %2269 = shalt.err (!%p2266_p10)
}
 0x24f   : > { %s2270_s7 = scalar_lea.hbm %s2996_s6, 256  ;;  %s2274_s2 = scalar_lea.hbm %s3145_s5, 1024 }
 0x250   : > { %p2271_p7 = scmp.ne.s32.totalorder %s2996_s6, %s2270_s7  ;;  %p2275_p2 = scmp.lt.u32.totalorder %s2996_s6, %s3145_s5 }
 0x251   : > { %p2276_p0 = scmp.lt.u32.totalorder %s2274_s2, %s2270_s7  ;;  %p2278_p6 = scmp.lt.u32.totalorder %s2270_s7, %s2996_s6 }
 0x252   : > { %p2272_p1 = pnand %p2271_p7, %p3146_p3 }
 0x253   : > { %p2277_p4 = por %p2276_p0, %p2275_p2 }
 0x254   : > { %p2273_p8 = pneg %p2272_p1 }
 0x255   : > { %p2279_p9 = por %p2278_p6, %p2277_p4 }
 0x257   : > { %p2280_p13 = pnand %p2279_p9, %p2273_p8 }
 0x259   : > { %2283 = shalt.err (!%p2280_p13)
}
 0x25a   : > { %s2430_s11 = smov 128   ;;  %s2431_s9 = smov 512  }
 0x25b   : > { %s2432_s14 = smov 8  }
 0x25c   : > { %1924 = dma.vmem_to_hbm [thread:$0]  (%p3146_p3), %s2999_s22, 256, %s2996_s6, %s1273_s10, %s2430_s11, %s2431_s9, %s2432_s14  }
 0x25d PF: > { %p1947_p5 = scmp.ge.s32.totalorder %s2414_s28, 2  ;;  %s1300_s26 = sand.u32 1, %s2362_s15  }
 0x25e   : > { %p3147_p11 = scmp.ne.s32.totalorder %s3131_s4, 0  ;;  %s1301_s29 = scalar_lea.sflag [#allocation6], %s1300_s26 }
 0x260   : > { %p1941_p12 = pnand %p1947_p5, %p3147_p11 }
 0x262   : > { %2357 = dma.done.wait (!%p1941_p12), %s1301_s29, 256  }
 0x263   : > { %2359 = vsyncadd (!%p1941_p12), %s1301_s29, 4294967040  ;;  %s26_s28 = sadd.s32 1, %s2414_s28   ;;  %s3149_s21 = sld [smem:[#allocation18_spill]] }
 0x264   : > { %p3030_p10 = scmp.ge.s32.totalorder %s26_s28, 10   ;;  %s3150_s24 = sld [smem:[#allocation21_spill]] }
 0x265   : > { %s3151_s26 = sld [smem:[#allocation23_spill]]  ;;  %s3152_s4 = sld [smem:[#allocation25_spill]] }
 0x266   : > { %s3153_s15 = smov %s2366_s16  ;;  %s3154_s16 = smov %s2370_s17 }
 0x267   : > { %s3155_s17 = smov %s2726_s13  ;;  %s3156_s18 = smov %s2378_s19 }
 0x268   : > { %s3157_s19 = smov %s2382_s20  ;;  %s3158_s20 = smov %s2677_s0 }
 0x269   : > { %s3159_s22 = smov %s2394_s23  ;;  %s3160_s23 = smov %s2613_s25 }
 0x26a   : > { %s3161_s25 = smov %s2410_s27  ;;  %25 = sbr.rel (!%p3030_p10) target bundleno = 18 (0x12), region = 127 }
 0x26b   : > { %s3162_s27 = smov %s3152_s4 }
 0x271   :  { %1306 = vsyncpa [#allocation5], 1 }
 0x272   :  { %1308 = vsyncpa [#allocation5 + $0x1], 1 }
 0x273   :  { %1309 = vsyncpa [#allocation8], 1 }
 0x274   :  { %1311 = vsyncpa [#allocation8 + $0x1], 1 }
 0x275   :  { %1312 = vsyncpa [#allocation11], 1 }
 0x276   :  { %1314 = vsyncpa [#allocation11 + $0x1], 1 }
 0x277   :  { %1315 = vsyncpa [#allocation6], 1 }
 0x278   :  { %1317 = vsyncpa [#allocation6 + $0x1], 1 }

</bundles_post_ra>
